<compile_context>
chip_gen: v7x
topology: tpu7x:2x2x1
jax: 0.10.0
libtpu: 0.0.40
codegen_flags: <defaults>
</compile_context>

<pallas_src>
import functools

import jax
import jax.numpy as jnp
from jax.experimental import pallas as pl
from jax.experimental.pallas import tpu as pltpu


def _round_up(x, m):
    return ((x + m - 1) // m) * m


def _cdiv(a, b):
    return (a + b - 1) // b


def _vmem_capacity_bytes():
    """Physical VMEM capacity; conservative (v7x per-core) fallback if unknown."""
    try:
        cap = int(pltpu.get_tpu_info().vmem_capacity_bytes)
        if cap > 0:
            return cap
    except Exception:
        pass
    return 64 * 1024 * 1024


def _pick_batch_tile(B, d_block, H, last_itemsize, budget):
    """Largest batch tile that amortizes per-grid-step overhead and fits VMEM."""
    if B <= 8:
        return max(B, 1)                       # single full-dim block
    g = 16 if B >= 16 else 8                   # bf16 packs 16 rows per sublane group
    # Per-row pipelined VMEM: double-buffered f32 x tile + last_emb out tile,
    # plus in-kernel bf16 copy of the x tile and the f32 hidden / accumulator.
    per_row = 2 * d_block * 4 + 2 * H * last_itemsize + d_block * 2 + 2 * H * 4
    fixed = 2 * d_block * H * 4 + d_block * H * 2 + 4 * 2 * H * 4
    avail = budget - fixed
    if avail <= per_row * g:
        cap_rows = g
    else:
        cap_rows = min(512, max(g, (avail // per_row) // g * g))
    tb_floor = max(g, (B // g) * g)            # keep block <= batch dim
    # Prefer >= 2 grid steps so both v7x TensorCores get work.
    tb = max(g, min(cap_rows, tb_floor, _round_up(_cdiv(B, 2), g)))
    # Prefer an even number of grid steps (megacore balance) when it is free.
    nt = _cdiv(B, tb)
    if nt > 1 and nt % 2 == 1:
        tb_alt = _round_up(_cdiv(B, nt + 1), g)
        if g <= tb_alt <= tb_floor and _cdiv(B, tb_alt) % 2 == 0:
            tb = tb_alt
    return tb


def _vmem_limit_bytes(tb, d_block, H, last_itemsize, cap):
    fp = 2 * tb * d_block * 4                    # x tile    (f32, double-buffered)
    fp += 2 * d_block * H * 4                    # W1 block  (f32, double-buffered)
    fp += 2 * 2 * H * 4                          # b1, w2
    fp += 2 * tb * H * last_itemsize             # last_emb out tile
    fp += 2 * 2 * tb * 4                         # logits / probs out tiles
    fp += tb * d_block * 2 + d_block * H * 2     # in-kernel bf16 copies
    fp += 2 * tb * H * 4                         # f32 hidden + accumulator scratch
    limit = int(fp * 1.5) + (2 << 20)
    hi = min(100 * 1024 * 1024, int(cap * 0.9))
    lo = min(32 * 1024 * 1024, hi)
    return max(min(limit, hi), lo)


def _finish(h, b1, w2, b2_scalar, last_ref, logit_ref, prob_ref):
    """Bias + LeakyReLU + hidden->1 head + sigmoid, with lane-dense head stores."""
    h = h + b1
    h = jnp.maximum(h, 0.2 * h)                  # LeakyReLU(0.2): one VALU op fewer
    last_ref[...] = h.astype(last_ref.dtype)     # bf16 writeback (bandwidth win)
    # Head: VPU multiply + XLU lane reduction (avoids a degenerate N=1 MXU matmul).
    logits = jnp.sum(h * w2, axis=-1, keepdims=True) + b2_scalar     # (tb, 1)
    probs = jax.nn.sigmoid(logits)                                   # EUP
    tb = logits.shape[0]
    # Column -> lane-dense row relayout so the HBM stores are unmasked vst's.
    logit_ref[...] = logits.reshape(1, 1, tb).astype(logit_ref.dtype)
    prob_ref[...] = probs.reshape(1, 1, tb).astype(prob_ref.dtype)


def _disc_kernel(x_ref, w1_ref, b1_ref, w2_ref, b2_ref,
                 last_ref, logit_ref, prob_ref, *, compute_dtype):
    """One batch tile, W1 fully resident (single hidden layer)."""
    # Cast the f32 HBM operands to the MXU compute dtype on the VMEM tile (VPU
    # work hidden under DMA) instead of a separate whole-array cast pass in HBM.
    x = x_ref[...].astype(compute_dtype)
    w1 = w1_ref[...].astype(compute_dtype)
    h = jnp.dot(x, w1, preferred_element_type=jnp.float32)
    _finish(h, b1_ref[...], w2_ref[...], b2_ref[0, 0], last_ref, logit_ref, prob_ref)


def _disc_kernel_ktiled(x_ref, w1_ref, b1_ref, w2_ref, b2_ref,
                        last_ref, logit_ref, prob_ref, acc_ref, *, compute_dtype):
    """Batch tile x reduction(D) tile: used when W1 would not fit the VMEM budget."""
    k = pl.program_id(1)

    @pl.when(k == 0)
    def _():
        acc_ref[...] = jnp.zeros_like(acc_ref)

    x = x_ref[...].astype(compute_dtype)
    w1 = w1_ref[...].astype(compute_dtype)
    acc_ref[...] += jnp.dot(x, w1, preferred_element_type=jnp.float32)

    @pl.when(k == pl.num_programs(1) - 1)
    def _():
        _finish(acc_ref[...], b1_ref[...], w2_ref[...], b2_ref[0, 0],
                last_ref, logit_ref, prob_ref)


@functools.partial(jax.jit,
                   static_argnames=("compute_dtype", "last_emb_dtype", "k_tile"))
def discriminator_forward(x, w1, b1, w2, b2, *, compute_dtype=jnp.bfloat16,
                          last_emb_dtype=jnp.bfloat16, k_tile=None):
    """Forward of the PyTorch Discriminator (single hidden layer, eval mode).

    x : [B, D] (f32; cast to `compute_dtype` on the VMEM tile, never in HBM)
    w1: [D, H]  == layers[0].weight.T        b1: [H]
    w2: [1, H]  == logit.weight              b2: [1]
    Returns (last_emb [B, H] `last_emb_dtype`, logits [B, 1] f32, probs [B, 1] f32).
    """
    B, D = x.shape
    H = w1.shape[1]
    last_itemsize = jnp.dtype(last_emb_dtype).itemsize

    cap = _vmem_capacity_bytes()
    budget = int(cap * 0.45)                 # per-core budget for pipelined buffers

    # ---- generation-aware residency plan (v7x: 64 MiB / TensorCore) -----------
    if k_tile is not None:
        tk = int(k_tile)
        use_k = 0 < tk < D
        if use_k and (D % tk != 0 or tk % 128 != 0):
            raise ValueError("k_tile must be a multiple of 128 that divides D")
    else:
        w_resident = 2 * D * H * 4 + D * H * 2   # dbl-buffered f32 W1 + bf16 copy
        use_k = w_resident > budget // 2
        tk = D
        if use_k:
            cands = [c for c in range(128, D, 128) if D % c == 0]
            if cands:
                fits = [c for c in cands if (2 * c * H * 4 + c * H * 2) <= budget // 2]
                tk = max(fits) if fits else min(cands)
            else:
                use_k = False   # D not a multiple of 128: keep W1 fully resident
    if not use_k:
        tk = D

    tb = _pick_batch_tile(B, tk, H, last_itemsize, budget)
    num_b = _cdiv(B, tb)
    num_k = D // tk if use_k else 1

    b1f = jnp.reshape(b1, (1, H)).astype(jnp.float32)
    w2f = jnp.reshape(w2, (1, H)).astype(jnp.float32)
    b2f = jnp.reshape(b2, (1, 1)).astype(jnp.float32)   # scalar bias -> SMEM

    out_shapes = (
        jax.ShapeDtypeStruct((B, H), last_emb_dtype),
        jax.ShapeDtypeStruct((num_b, 1, tb), jnp.float32),
        jax.ShapeDtypeStruct((num_b, 1, tb), jnp.float32),
    )

    vmem_limit = _vmem_limit_bytes(tb, tk, H, last_itemsize, cap)
    cost = pl.CostEstimate(
        flops=2 * B * D * H + 6 * B * H,
        transcendentals=B,                           # sigmoid
        bytes_accessed=(B * D * x.dtype.itemsize
                        + (num_b if use_k else 1) * D * H * 4
                        + 2 * H * 4
                        + B * H * last_itemsize
                        + 2 * num_b * tb * 4),
    )

    b2_spec = pl.BlockSpec(memory_space=pltpu.MemorySpace.SMEM)

    if not use_k:
        grid_spec = pltpu.PrefetchScalarGridSpec(
            num_scalar_prefetch=0,
            grid=(num_b,),
            in_specs=[
                pl.BlockSpec((tb, D), lambda i: (i, 0)),     # x tile (streamed)
                # Grid-invariant operands (constant index_map => fetched once).
                pl.BlockSpec((D, H), lambda i: (0, 0)),      # W1 resident
                pl.BlockSpec((1, H), lambda i: (0, 0)),      # b1
                pl.BlockSpec((1, H), lambda i: (0, 0)),      # w2 row
                b2_spec,                                     # b2 scalar in SMEM
            ],
            out_specs=[
                pl.BlockSpec((tb, H), lambda i: (i, 0)),         # last_emb
                pl.BlockSpec((1, 1, tb), lambda i: (i, 0, 0)),   # logits (lane-dense)
                pl.BlockSpec((1, 1, tb), lambda i: (i, 0, 0)),   # probs  (lane-dense)
            ],
        )
        kernel = functools.partial(_disc_kernel, compute_dtype=compute_dtype)
        dim_sem = ("parallel",)
    else:
        grid_spec = pltpu.PrefetchScalarGridSpec(
            num_scalar_prefetch=0,
            grid=(num_b, num_k),                             # reduction axis last
            in_specs=[
                pl.BlockSpec((tb, tk), lambda i, k: (i, k)),
                pl.BlockSpec((tk, H), lambda i, k: (k, 0)),
                pl.BlockSpec((1, H), lambda i, k: (0, 0)),
                pl.BlockSpec((1, H), lambda i, k: (0, 0)),
                b2_spec,
            ],
            out_specs=[
                pl.BlockSpec((tb, H), lambda i, k: (i, 0)),
                pl.BlockSpec((1, 1, tb), lambda i, k: (i, 0, 0)),
                pl.BlockSpec((1, 1, tb), lambda i, k: (i, 0, 0)),
            ],
            scratch_shapes=[pltpu.VMEM((tb, H), jnp.float32)],   # f32 accumulator
        )
        kernel = functools.partial(_disc_kernel_ktiled, compute_dtype=compute_dtype)
        dim_sem = ("parallel", "arbitrary")

    last_emb, logit_t, prob_t = pl.pallas_call(
        kernel,
        out_shape=out_shapes,
        grid_spec=grid_spec,
        compiler_params=pltpu.CompilerParams(
            dimension_semantics=dim_sem,
            vmem_limit_bytes=vmem_limit),
        cost_estimate=cost,
    )(x, w1, b1f, w2f, b2f)

    logits = logit_t.reshape(num_b * tb, 1)[:B]
    probs = prob_t.reshape(num_b * tb, 1)[:B]
    return last_emb, logits, probs


def init_params(key, input_dim, hidden_dim):
    """PyTorch-Linear-style init: U(-1/sqrt(fan_in), 1/sqrt(fan_in))."""
    k1, k2, k3, k4 = jax.random.split(key, 4)
    b1b = 1.0 / (input_dim ** 0.5)
    b2b = 1.0 / (hidden_dim ** 0.5)
    w1 = jax.random.uniform(k1, (input_dim, hidden_dim), jnp.float32, -b1b, b1b)
    b1 = jax.random.uniform(k2, (hidden_dim,), jnp.float32, -b1b, b1b)
    w2 = jax.random.uniform(k3, (1, hidden_dim), jnp.float32, -b2b, b2b)
    b2 = jax.random.uniform(k4, (1,), jnp.float32, -b2b, b2b)
    return w1, b1, w2, b2


def reference_forward(x, w1, b1, w2, b2, compute_dtype=jnp.bfloat16):
    """Pure-JAX reference using the same compute-dtype contract as the kernel."""
    h = jnp.dot(x.astype(compute_dtype), w1.astype(compute_dtype),
                preferred_element_type=jnp.float32) + jnp.reshape(b1, (1, -1))
    h = jnp.maximum(h, 0.2 * h)
    logits = (jnp.sum(h * jnp.reshape(w2, (1, -1)), axis=-1, keepdims=True)
              + jnp.reshape(b2, (1, 1)))
    return h, logits, jax.nn.sigmoid(logits)


def _check(name, x, params, **kw):
    last, logits, probs = discriminator_forward(x, *params, **kw)
    jax.block_until_ready((last, logits, probs))
    r_last, r_logits, r_probs = reference_forward(x, *params)
    B, H = r_last.shape
    assert last.shape == (B, H), name
    assert logits.shape == (B, 1) and probs.shape == (B, 1), name
    # last_emb is stored in bf16 (writeback-bandwidth win) -> bf16-level tolerance.
    assert jnp.allclose(last.astype(jnp.float32), r_last, atol=3e-2, rtol=3e-2), name
    assert jnp.allclose(logits, r_logits, atol=2e-4, rtol=1e-4), name
    assert jnp.allclose(probs, r_probs, atol=2e-4, rtol=1e-4), name


if __name__ == "__main__":
    key = jax.random.PRNGKey(0)
    k1, k2, k3, k4, k5, k6 = jax.random.split(key, 6)

    # 1) Small single-tile config: batch=8, input_dim=32, hidden_dims=[32].
    B, D, H = 8, 32, 32
    x = jax.random.normal(k1, (B, D), jnp.float32)
    p = init_params(k2, D, H)
    _check("small", x, p)

    # 2) Ragged batch, multi-tile grid (masked boundary block, no padded copy).
    B2, D2, H2 = 44, 128, 256
    x2 = jax.random.normal(k3, (B2, D2), jnp.float32)
    p2 = init_params(k4, D2, H2)
    _check("ragged", x2, p2)

    # 3) Force the K-tiled (reduction-axis) path used on v7x when W1 would not
    #    fit the per-core VMEM budget.
    B3, D3, H3 = 64, 256, 256
    x3 = jax.random.normal(k5, (B3, D3), jnp.float32)
    p3 = init_params(k6, D3, H3)
    _check("ktiled", x3, p3, k_tile=128)

    print("KERNEL_OK")
</pallas_src>

<mosaic_0001>
module attributes {stable_mosaic.version = 11 : i64} {
  func.func @_disc_kernel(%arg0: i32, %arg1: memref<8x32xf32, #tpu.memory_space<vmem>>, %arg2: memref<32x32xf32, #tpu.memory_space<vmem>>, %arg3: memref<1x32xf32, #tpu.memory_space<vmem>>, %arg4: memref<1x32xf32, #tpu.memory_space<vmem>>, %arg5: memref<1x1xf32, #tpu.memory_space<smem>>, %arg6: memref<8x32xbf16, #tpu.memory_space<vmem>>, %arg7: memref<1x1x8xf32, #tpu.memory_space<vmem>>, %arg8: memref<1x1x8xf32, #tpu.memory_space<vmem>>) attributes {dimension_semantics = [#tpu.dimension_semantics<parallel>], iteration_bounds = array<i64: 1>, scalar_prefetch = 0 : i64, scratch_operands = 0 : i64, tpu.core_type = #tpu.core_type<tc>, window_params = [{transform_indices = @transform_0, window_bounds = array<i64: 8, 32>}, {pipeline_mode = #tpu.pipeline_mode<synchronous>, transform_indices = @transform_1, window_bounds = array<i64: 32, 32>}, {pipeline_mode = #tpu.pipeline_mode<synchronous>, transform_indices = @transform_2, window_bounds = array<i64: 1, 32>}, {pipeline_mode = #tpu.pipeline_mode<synchronous>, transform_indices = @transform_3, window_bounds = array<i64: 1, 32>}, {transform_indices = @transform_4, window_bounds = array<i64: 1, 1>}, {transform_indices = @transform_5, window_bounds = array<i64: 8, 32>}, {transform_indices = @transform_6, window_bounds = array<i64: 1, 1, 8>}, {transform_indices = @transform_7, window_bounds = array<i64: 1, 1, 8>}]} {
    %c0 = arith.constant 0 : index
    %c0_0 = arith.constant 0 : index
    %0 = vector.load %arg1[%c0, %c0_0] : memref<8x32xf32, #tpu.memory_space<vmem>>, vector<8x32xf32>
    %1 = arith.truncf %0 : vector<8x32xf32> to vector<8x32xbf16>
    %c0_1 = arith.constant 0 : index
    %c0_2 = arith.constant 0 : index
    %2 = vector.load %arg2[%c0_1, %c0_2] : memref<32x32xf32, #tpu.memory_space<vmem>>, vector<32x32xf32>
    %3 = arith.truncf %2 : vector<32x32xf32> to vector<32x32xbf16>
    %cst = arith.constant dense<0.000000e+00> : vector<8x32xf32>
    %4 = tpu.matmul %1, %3, %cst {dimension_numbers = #tpu.dot_dimension_numbers<[1], [0], [0], [1], [0, 0, 1, 1], [], []>} : vector<8x32xbf16>, vector<32x32xbf16>, vector<8x32xf32> -> vector<8x32xf32>
    %c0_3 = arith.constant 0 : index
    %c0_4 = arith.constant 0 : index
    %5 = vector.load %arg3[%c0_3, %c0_4] : memref<1x32xf32, #tpu.memory_space<vmem>>, vector<1x32xf32>
    %c0_5 = arith.constant 0 : index
    %c0_6 = arith.constant 0 : index
    %6 = vector.load %arg4[%c0_5, %c0_6] : memref<1x32xf32, #tpu.memory_space<vmem>>, vector<1x32xf32>
    %c0_7 = arith.constant 0 : index
    %c0_8 = arith.constant 0 : index
    %7 = memref.load %arg5[%c0_7, %c0_8] : memref<1x1xf32, #tpu.memory_space<smem>>
    %8 = vector.broadcast %5 : vector<1x32xf32> to vector<8x32xf32>
    %9 = arith.addf %4, %8 : vector<8x32xf32>
    %cst_9 = arith.constant 2.000000e-01 : f32
    %10 = vector.broadcast %cst_9 : f32 to vector<8x32xf32>
    %11 = arith.mulf %10, %9 : vector<8x32xf32>
    %12 = arith.maximumf %9, %11 : vector<8x32xf32>
    %13 = arith.truncf %12 : vector<8x32xf32> to vector<8x32xbf16>
    %c0_10 = arith.constant 0 : index
    %c0_11 = arith.constant 0 : index
    %14 = vector.load %arg6[%c0_10, %c0_11] : memref<8x32xbf16, #tpu.memory_space<vmem>>, vector<8x32xbf16>
    tpu.vector_store %arg6[%c0_10, %c0_11], %13 {strides = array<i32>} : memref<8x32xbf16, #tpu.memory_space<vmem>>, vector<8x32xbf16>,
    %15 = vector.broadcast %6 : vector<1x32xf32> to vector<8x32xf32>
    %16 = arith.mulf %12, %15 : vector<8x32xf32>
    %cst_12 = arith.constant dense<0.000000e+00> : vector<8xf32>
    %17 = vector.multi_reduction <add>, %16, %cst_12 [1] : vector<8x32xf32> to vector<8xf32>
    %18 = vector.shape_cast %17 : vector<8xf32> to vector<8x1xf32>
    %19 = vector.broadcast %7 : f32 to vector<8x1xf32>
    %20 = arith.addf %18, %19 : vector<8x1xf32>
    %21 = arith.negf %20 : vector<8x1xf32>
    %22 = math.exp %21 : vector<8x1xf32>
    %cst_13 = arith.constant 1.000000e+00 : f32
    %23 = vector.broadcast %cst_13 : f32 to vector<8x1xf32>
    %24 = arith.addf %23, %22 : vector<8x1xf32>
    %25 = arith.divf %23, %24 : vector<8x1xf32>
    %26 = vector.shape_cast %20 : vector<8x1xf32> to vector<1x1x8xf32>
    %c0_14 = arith.constant 0 : index
    %c0_15 = arith.constant 0 : index
    %c0_16 = arith.constant 0 : index
    %27 = vector.load %arg7[%c0_14, %c0_15, %c0_16] : memref<1x1x8xf32, #tpu.memory_space<vmem>>, vector<1x1x8xf32>
    tpu.vector_store %arg7[%c0_14, %c0_15, %c0_16], %26 {strides = array<i32>} : memref<1x1x8xf32, #tpu.memory_space<vmem>>, vector<1x1x8xf32>,
    %28 = vector.shape_cast %25 : vector<8x1xf32> to vector<1x1x8xf32>
    %c0_17 = arith.constant 0 : index
    %c0_18 = arith.constant 0 : index
    %c0_19 = arith.constant 0 : index
    %29 = vector.load %arg8[%c0_17, %c0_18, %c0_19] : memref<1x1x8xf32, #tpu.memory_space<vmem>>, vector<1x1x8xf32>
    tpu.vector_store %arg8[%c0_17, %c0_18, %c0_19], %28 {strides = array<i32>} : memref<1x1x8xf32, #tpu.memory_space<vmem>>, vector<1x1x8xf32>,
    return
  }
  func.func @transform_0(%arg0: i32) -> (i32, i32) {
    %c0_i32 = arith.constant 0 : i32
    %c0_i32_0 = arith.constant 0 : i32
    return %arg0, %c0_i32 : i32, i32
  }
  func.func @transform_1(%arg0: i32) -> (i32, i32) {
    %c0_i32 = arith.constant 0 : i32
    %c0_i32_0 = arith.constant 0 : i32
    %c0_i32_1 = arith.constant 0 : i32
    return %c0_i32, %c0_i32_0 : i32, i32
  }
  func.func @transform_2(%arg0: i32) -> (i32, i32) {
    %c0_i32 = arith.constant 0 : i32
    %c0_i32_0 = arith.constant 0 : i32
    %c0_i32_1 = arith.constant 0 : i32
    return %c0_i32, %c0_i32_0 : i32, i32
  }
  func.func @transform_3(%arg0: i32) -> (i32, i32) {
    %c0_i32 = arith.constant 0 : i32
    %c0_i32_0 = arith.constant 0 : i32
    %c0_i32_1 = arith.constant 0 : i32
    return %c0_i32, %c0_i32_0 : i32, i32
  }
  func.func @transform_4(%arg0: i32) -> (i32, i32) {
    %c0_i32 = arith.constant 0 : i32
    %c0_i32_0 = arith.constant 0 : i32
    %c0_i32_1 = arith.constant 0 : i32
    return %c0_i32, %c0_i32_0 : i32, i32
  }
  func.func @transform_5(%arg0: i32) -> (i32, i32) {
    %c0_i32 = arith.constant 0 : i32
    %c0_i32_0 = arith.constant 0 : i32
    return %arg0, %c0_i32 : i32, i32
  }
  func.func @transform_6(%arg0: i32) -> (i32, i32, i32) {
    %c0_i32 = arith.constant 0 : i32
    %c0_i32_0 = arith.constant 0 : i32
    %c0_i32_1 = arith.constant 0 : i32
    return %arg0, %c0_i32, %c0_i32_0 : i32, i32, i32
  }
  func.func @transform_7(%arg0: i32) -> (i32, i32, i32) {
    %c0_i32 = arith.constant 0 : i32
    %c0_i32_0 = arith.constant 0 : i32
    %c0_i32_1 = arith.constant 0 : i32
    return %arg0, %c0_i32, %c0_i32_0 : i32, i32, i32
  }
}

</mosaic_0001>

<bundles_post_ra>
// kernel: discriminator_forward.1
= control target key start
LH: loop header
LB: loop body
LE: loop exit
PB: predicated region body
PF: predicated region fallthrough
CT: control target
= control target key end

     0   :  { %14 = vsyncpa [#allocation4], 0  ;;  %s415_s0 = inlined_call_operand.vmem [shape: f32[8,32], index: 0, kind: input, shape index: {}]   ;;  %s416_s1 = inlined_call_operand.hbm [shape: f32[32,32], index: 1, kind: input, shape index: {}]   ;;  %s417_s2 = inlined_call_operand.vmem [shape: f32[1,32], index: 2, kind: input, shape index: {}]   ;;  %s418_s3 = inlined_call_operand.vmem [shape: f32[1,32], index: 3, kind: input, shape index: {}]   ;;  %s419_s4 = inlined_call_operand.<no memory space> [shape: f32[1,1], index: 4, kind: input, shape index: {}]   ;;  %s420_s5 = inlined_call_operand.hbm [shape: bf16[8,32], index: 5, kind: output, shape index: {0}]   ;;  %s421_s6 = inlined_call_operand.hbm [shape: f32[1,1,8], index: 6, kind: output, shape index: {1}]   ;;  %s422_s7 = inlined_call_operand.hbm [shape: f32[1,1,8], index: 7, kind: output, shape index: {2}]  }
   0x1   :  { %15 = vsyncpa [#allocation5], 0 }
   0x2   :  { %16 = vsyncpa [#allocation8], 0  ;;  %s305_s24 = smov [#allocation3]   ;;  %s211_s28 = scalar_lea.hbm %s416_s1, 512 }
   0x3   :  { %s24_s25 = sshll.u32 %s305_s24, 4  ;;  %p212_p0 = scmp.ne.s32.totalorder %s416_s1, %s211_s28  ;;  %s25_s25 = int_to_ptr.vmem [resolvable:$true] %s24_s25 }
   0x4   :  { %p215_p1 = scmp.lt.u32.totalorder %s211_s28, %s416_s1 }
   0x6   :  { %p217_p2 = pnand %p215_p1, %p212_p0 }
   0x8   :  { %220 = shalt.err (!%p217_p2)
}
   0x9   :  { %s221_s10 = scalar_lea.vmem %s25_s25, 512  ;;  %p226_p4 = scmp.lt.s32.totalorder %s25_s25, %s25_s25 }
   0xa   :  { %p222_p3 = scmp.ne.s32.totalorder %s25_s25, %s221_s10  ;;  %p227_p5 = scmp.lt.s32.totalorder %s221_s10, %s221_s10 }
   0xc   :  { %p228_p6 = por %p227_p5, %p226_p4 }
   0xe   :  { %p229_p7 = pnand %p228_p6, %p222_p3 }
  0x10   :  { %232 = shalt.err (!%p229_p7)
}
  0x11   :  { %s306_s11 = smov 128   ;;  %s307_s12 = smov 8  }
  0x12   :  { %30 = dma.hbm_to_vmem [thread:$0]  %s416_s1, 512, %s25_s25, [#allocation4], %s306_s11, %s306_s11, %s307_s12  }
  0x13   :  { %299 = dma.done.wait [#allocation4], 512  }
  0x14   :  { %300 = vsyncadd [#allocation4], 4294966784  ;;  %v308_v0 = vmov 0.0   ;;  %vm309_vm0 = vmmov 0   ;;  %v43_v1 = vld [vmem:[#allocation3] sm:$0xff]  ;;  %v44_v2 = vld [vmem:[#allocation3 + $0x8] sm:$0xff] }
  0x15   :  { %191 = vmatprep.subr.bf16.mxu0 %v308_v0  ;;  %195 = vmatprep.mubr.msk.bf16.mxu0 %vm309_vm0, %v308_v0  ;;  %v45_v3 = vld [vmem:[#allocation3 + $0x10] sm:$0xff]  ;;  %v47_v4 = vpack.c.bf16 %v44_v2, %v43_v1  ;;  %v46_v5 = vld [vmem:[#allocation3 + $0x18] sm:$0xff]  ;;  %v41_v7 = vld [vmem:[%s415_s0] sm:$0xff]  ;;  %vm58_vm1 = vcmask 261120   ;;  %vm105_vm2 = vcmask 257024   ;;  %s310_s0 = smov [#allocation6]  }
  0x16   :  { %v48_v6 = vpack.c.bf16 %v46_v5, %v45_v3  ;;  %v42_v8 = vpack.c.bf16 %v41_v7, %v41_v7  ;;  %v184_v9 = vld [vmem:[%s417_s2] ss:$0 sm:$0xff]  ;;  %s148_s20 = sshll.u32 %s310_s0, 4  ;;  %s149_s20 = int_to_ptr.vmem [resolvable:$true] %s148_s20 }
  0x17   :  { %192 = vmatpush3.bf16.msra.mxu0 %v47_v4  ;;  %v186_v16 = vld [vmem:[%s418_s3] ss:$0 sm:$0xff]  ;;  %s233_s2 = scalar_lea.vmem %s149_s20, 64  ;;  %p238_p9 = scmp.lt.s32.totalorder %s149_s20, %s149_s20 }
  0x18   :  { %193 = vmatprep.subr.bf16.mxu0 %v308_v0  ;;  %p234_p8 = scmp.ne.s32.totalorder %s149_s20, %s233_s2  ;;  %p239_p10 = scmp.lt.s32.totalorder %s233_s2, %s233_s2 }
  0x1a   :  { %p240_p11 = por %p239_p10, %p238_p9 }
  0x1b   :  { %194 = vmatpush3.bf16.msra.mxu0 %v48_v6 }
  0x1c   :  { %p241_p12 = pnand %p240_p11, %p234_p8 }
  0x1e   :  { %196 = vmatmul.mubr.msk.bf16.vlgmr.msra.gmra.mrb[0].mxu0 %vm58_vm1, %v42_v8 }
  0xf1   :  { %v96_v10 = vpop.f32.mrb[0].mxu0 }
  0xf2   :  { %v97_v11 = vadd.f32 %v184_v9, %v96_v10  ;;  %v197_v12 = vpop.f32.mrb[1].mxu0 }
  0xf3   :  { %v99_v13 = vpop.f32.mrb[2].mxu0 }
  0xf4   :  { %v102_v14 = vmul.f32 0.2, %v97_v11  ;;  %v198_v15 = vpop.f32.mrb[3].mxu0 }
  0xf6   :  { %v103_v17 = vmax.f32 %v97_v11, %v102_v14 }
  0xf8   :  { %v104_v18 = vpack.c.bf16 %v103_v17, %v103_v17  ;;  %v113_v19 = vmul.f32 %v186_v16, %v103_v17 }
  0xfa   :  { %v114_v20 = vsel %vm58_vm1, %v113_v19, 0.0  ;;  %106 = vst.msk [vmem:[#allocation6] sm:$0xf] %vm105_vm2, %v104_v18 }
  0xfb   :  { %115 = vadd.xlane.f32.xlu0 %v114_v20 }
  0xfc   :  { %244 = shalt.err (!%p241_p12)
}
  0xfd   :  { %s245_s3 = scalar_lea.hbm %s420_s5, 64 }
  0xfe   :  { %p246_p13 = scmp.ne.s32.totalorder %s420_s5, %s245_s3  ;;  %p249_p0 = scmp.lt.u32.totalorder %s245_s3, %s420_s5 }
 0x100   :  { %p251_p1 = pnand %p249_p0, %p246_p13 }
 0x102   :  { %254 = shalt.err (!%p251_p1)
}
 0x103   :  { %151 = dma.vmem_to_hbm [thread:$0]  %s149_s20, 64, %s420_s5, [#allocation5]   ;;  %v126_v21 = vlaneseq  ;;  %v117_v24 = vstv %s419_s4  ;;  %vm133_vm3 = vcmask 57344  }
 0x104   :  { %s311_s8 = smov [#allocation7]  }
 0x105   :  { %v127_v22 = vand.u32 127, %v126_v21  ;;  %v129_v23 = vshrl.u32 %v126_v21, 7  ;;  %s158_s9 = sshll.u32 %s311_s8, 4  ;;  %s159_s9 = int_to_ptr.vmem [resolvable:$true] %s158_s9 }
 0x106   :  { %s255_s5 = scalar_lea.vmem %s159_s9, 16  ;;  %s259_s10 = scalar_lea.vmem %s159_s9, 32 }
 0x107   :  { %v130_v25 = vsub.s32 %v127_v22, %v129_v23  ;;  %p256_p2 = scmp.ne.s32.totalorder %s159_s9, %s255_s5  ;;  %p260_p3 = scmp.lt.s32.totalorder %s159_s9, %s159_s9 }
 0x108   :  { %p261_p4 = scmp.lt.s32.totalorder %s259_s10, %s255_s5 }
 0x10a   :  { %p262_p5 = por %p261_p4, %p260_p3 }
 0x10c   :  { %p263_p6 = pnand %p262_p5, %p256_p2 }
 0x188   :  { %v116_v26 = vpop.xlane.xlu0 %115 }
 0x189   :  { %v118_v27 = vadd.f32 %v117_v24, %v116_v26 }
 0x18b   :  { %v187_v28 = vmul.f32 -1.442695, %v118_v27  ;;  %v131_v29 = vrot.slane %v118_v27, %v130_v25 }
 0x18d   :  { %207 = vpow2.f32 %v187_v28  ;;  %134 = vst.msk [vmem:[#allocation7] sm:$0x1] %vm133_vm3, %v131_v29 }
 0x18e   :  { %266 = shalt.err (!%p263_p6)
}
 0x18f   :  { %s267_s12 = scalar_lea.hbm %s421_s6, 16 }
 0x190   :  { %p268_p7 = scmp.ne.s32.totalorder %s421_s6, %s267_s12  ;;  %p271_p8 = scmp.lt.u32.totalorder %s267_s12, %s421_s6 }
 0x192   :  { %p273_p9 = pnand %p271_p8, %p268_p7 }
 0x194   :  { %276 = shalt.err (!%p273_p9)
}
 0x195   :  { %161 = dma.vmem_to_hbm [thread:$0]  %s159_s9, 16, %s421_s6, [#allocation8]  }
 0x196   :  { %s312_s18 = smov [#allocation9]  }
 0x197   :  { %v208_v30 = vpop.eup %207  ;;  %s168_s19 = sshll.u32 %s312_s18, 4  ;;  %s169_s19 = int_to_ptr.vmem [resolvable:$true] %s168_s19 }
 0x198   :  { %v122_v31 = vadd.f32 1.0, %v208_v30  ;;  %s277_s0 = scalar_lea.vmem %s169_s19, 16  ;;  %s281_s20 = scalar_lea.vmem %s169_s19, 32 }
 0x199   :  { %p278_p10 = scmp.ne.s32.totalorder %s169_s19, %s277_s0  ;;  %p282_p11 = scmp.lt.s32.totalorder %s169_s19, %s169_s19 }
 0x19a   :  { %209 = vrcp.f32 %v122_v31  ;;  %p283_p12 = scmp.lt.s32.totalorder %s281_s20, %s277_s0 }
 0x19c   :  { %p284_p13 = por %p283_p12, %p282_p11 }
 0x19e   :  { %p285_p0 = pnand %p284_p13, %p278_p10 }
 0x1a4   :  { %v210_v32 = vpop.eup %209 }
 0x1a5   :  { %v139_v33 = vrot.slane %v210_v32, %v130_v25 }
 0x1a7   :  { %141 = vst.msk [vmem:[#allocation9] sm:$0x1] %vm133_vm3, %v139_v33 }
 0x1a8   :  { %288 = shalt.err (!%p285_p0)
}
 0x1a9   :  { %s289_s21 = scalar_lea.hbm %s422_s7, 16 }
 0x1aa   :  { %p290_p1 = scmp.ne.s32.totalorder %s422_s7, %s289_s21  ;;  %p293_p2 = scmp.lt.u32.totalorder %s289_s21, %s422_s7 }
 0x1ac   :  { %p295_p3 = pnand %p293_p2, %p290_p1 }
 0x1ae   :  { %298 = shalt.err (!%p295_p3)
}
 0x1af   :  { %171 = dma.vmem_to_hbm [thread:$0]  %s169_s19, 16, %s422_s7, [#allocation8]  }
 0x1b0   :  { %301 = dma.done.wait [#allocation5], 64  }
 0x1b1   :  { %302 = vsyncadd [#allocation5], 4294967232 }
 0x1b2   :  { %303 = dma.done.wait [#allocation8], 32  }
 0x1b3   :  { %304 = vsyncadd [#allocation8], 4294967264 }
 0x1b4   :  { %181 = vsyncpa [#allocation4], 1 }
 0x1b5   :  { %182 = vsyncpa [#allocation5], 1 }
 0x1b6   :  { %183 = vsyncpa [#allocation8], 1 }

</bundles_post_ra>
